<compile_context>
chip_gen: v6e
topology: v6e:2x2x1
jax: 0.10.0
libtpu: 0.0.40
codegen_flags: <defaults>
</compile_context>

<pallas_src>
import jax
import jax.numpy as jnp
from jax.experimental import pallas as pl
from jax.experimental.pallas import tpu as pltpu


def _round_up(a: int, b: int) -> int:
    return (a + b - 1) // b * b


def _vmem_budget_bytes() -> int:
    """Per-generation VMEM working budget: 3/4 of physical, <= 100 MiB, >= 16 MiB."""
    try:
        phys = pltpu.get_tpu_info().vmem_capacity_bytes
    except Exception:
        phys = 64 * 1024 * 1024  # conservative (v7x per-TC VMEM)
    return max(min(int(phys * 3 // 4), 100 * 1024 * 1024), 16 * 1024 * 1024)


def _linear_relu_kernel(x_ref, w_ref, b_ref, o_ref):
    # (tm, d_in) @ (d_in, tn) on the MXU, f32 accumulation; bias + ReLU in vregs.
    z = jnp.dot(x_ref[...], w_ref[...], preferred_element_type=jnp.float32)
    z = z + b_ref[...]                                     # broadcast over rows (VPU)
    o_ref[...] = jnp.maximum(z, 0.0).astype(o_ref.dtype)   # ReLU, lane-dense store


def linear_relu(x, weight, bias, *, block_rows=None, block_cols=None,
                compute_dtype=None):
    """PyTorch-Linear semantics: x (..., d_in), weight (d_out, d_in), bias (d_out,).

    Returns relu(x @ weight.T + bias) with shape (..., d_out).
    compute_dtype (e.g. jnp.bfloat16) optionally casts the streamed operands; the
    MXU still accumulates in f32 and bias/ReLU/output stay in the input dtype.
    """
    orig_lead = x.shape[:-1]
    d_in = x.shape[-1]
    d_out = weight.shape[0]

    out_dtype = x.dtype
    op_dtype = jnp.dtype(compute_dtype) if compute_dtype is not None else jnp.dtype(x.dtype)

    x2 = x.reshape(-1, d_in).astype(op_dtype)
    n = x2.shape[0]

    # Lane-dense output: pad d_out up to a multiple of 128 so stores are unmasked
    # vst (biggest measured store-side lever); extra lanes are sliced off outside.
    d_out_p = _round_up(d_out, 128)
    w2 = weight.T.astype(op_dtype)                 # (d_in, d_out): d_out on lanes
    b2 = bias.reshape(1, d_out).astype(jnp.float32)
    if d_out_p != d_out:
        w2 = jnp.pad(w2, ((0, 0), (0, d_out_p - d_out)))
        b2 = jnp.pad(b2, ((0, 0), (0, d_out_p - d_out)))

    op_isz = op_dtype.itemsize
    out_isz = jnp.dtype(out_dtype).itemsize

    budget = _vmem_budget_bytes()
    work_budget = budget - (4 << 20)   # headroom for Mosaic internal scratch

    # --- d_out tile (tn): keep the weight VMEM-resident when it is small enough,
    # otherwise stream it over 256-wide (MXU-native on v6e/v7x) column tiles.
    w_bytes_full = d_in * d_out_p * op_isz
    if block_cols is not None:
        tn = min(d_out_p, _round_up(block_cols, 128))
        w_bufs = 1 if tn >= d_out_p else 2
    elif w_bytes_full <= work_budget // 2:
        tn = d_out_p
        w_bufs = 1                                  # constant index_map -> Buffered(1)
    else:
        tn = (work_budget // 2) // (2 * d_in * op_isz)
        tn = max(256, tn // 256 * 256)
        tn = min(tn, d_out_p)
        w_bufs = 2

    # --- batch tile (tm): budget-driven, multiple of 8 (f32 sublane), <= 1024 rows.
    fixed = w_bufs * d_in * tn * op_isz + 2 * tn * 4            # weight + bias
    per_row = 2 * d_in * op_isz + 2 * tn * out_isz              # x + out, double-buffered
    if block_rows is not None:
        tm = max(8, _round_up(block_rows, 8))
    else:
        tm = max(work_budget - fixed, 0) // max(per_row, 1)
        tm = max(8, min(tm // 8 * 8, 1024))
    tm = min(tm, _round_up(n, 8))

    grid = (pl.cdiv(n, tm), pl.cdiv(d_out_p, tn))   # partial blocks masked by Pallas

    if grid[1] == 1:
        # Whole weight / bias resident across all grid steps: single buffer each.
        w_spec = pl.BlockSpec((d_in, tn), lambda i, j: (0, j),
                              pipeline_mode=pl.Buffered(1))
        b_spec = pl.BlockSpec((1, tn), lambda i, j: (0, j),
                              pipeline_mode=pl.Buffered(1))
    else:
        # Streaming weight columns: keep default double-buffering for overlap.
        w_spec = pl.BlockSpec((d_in, tn), lambda i, j: (0, j))
        b_spec = pl.BlockSpec((1, tn), lambda i, j: (0, j))

    out = pl.pallas_call(
        _linear_relu_kernel,
        out_shape=jax.ShapeDtypeStruct((n, d_out_p), out_dtype),
        grid_spec=pltpu.PrefetchScalarGridSpec(
            num_scalar_prefetch=0,
            grid=grid,
            in_specs=[
                pl.BlockSpec((tm, d_in), lambda i, j: (i, 0)),   # x tile: resident
                w_spec,                                           #   across inner j
                b_spec,
            ],
            out_specs=pl.BlockSpec((tm, tn), lambda i, j: (i, j)),
        ),
        compiler_params=pltpu.CompilerParams(
            # batch axis shardable across TCs; d_out axis serial so x stays resident
            dimension_semantics=("parallel", "arbitrary"),
            vmem_limit_bytes=budget,
        ),
    )(x2, w2, b2)

    if d_out_p != d_out:
        out = out[:, :d_out]   # drop lane padding (only when d_out % 128 != 0)
    return out.reshape(*orig_lead, d_out)


def reference(x, weight, bias):
    """Pure-JAX reference matching the PyTorch forward."""
    return jnp.maximum(jnp.einsum('...i,oi->...o', x, weight) + bias, 0.0)


if __name__ == "__main__":
    key = jax.random.PRNGKey(0)

    # Case 1: lane-dense output (d_out = 128), batch 16, resident weight path.
    N, D_IN, D_OUT = 16, 32, 128
    k1, k2, k3 = jax.random.split(key, 3)
    x = jax.random.normal(k1, (N, D_IN), jnp.float32)
    w = jax.random.normal(k2, (D_OUT, D_IN), jnp.float32) / jnp.sqrt(D_IN)
    b = 0.1 * jax.random.normal(k3, (D_OUT,), jnp.float32)

    out = jax.block_until_ready(linear_relu(x, w, b))
    ref = reference(x, w, b)
    assert out.shape == (N, D_OUT)
    assert jnp.allclose(out, ref, atol=1e-5, rtol=1e-5), "case 1 mismatch"

    # Case 2: awkward sizes (batch 5, d_out 16) -> masked partial batch block and
    # d_out lane-padding to 128; still matches the reference.
    N2, D_IN2, D_OUT2 = 5, 24, 16
    k4, k5, k6 = jax.random.split(k3, 3)
    x2 = jax.random.normal(k4, (N2, D_IN2), jnp.float32)
    w2 = jax.random.normal(k5, (D_OUT2, D_IN2), jnp.float32) / jnp.sqrt(D_IN2)
    b2 = 0.1 * jax.random.normal(k6, (D_OUT2,), jnp.float32)

    out2 = jax.block_until_ready(linear_relu(x2, w2, b2))
    ref2 = reference(x2, w2, b2)
    assert out2.shape == (N2, D_OUT2)
    assert jnp.allclose(out2, ref2, atol=1e-5, rtol=1e-5), "case 2 mismatch"

    # Case 3: force the 2-D (batch x d_out) grid / streaming-weight path at small
    # scale (block_rows=16, block_cols=128 -> grid (4, 3)).
    N3, D_IN3, D_OUT3 = 64, 32, 384
    k7, k8, k9 = jax.random.split(k6, 3)
    x3 = jax.random.normal(k7, (N3, D_IN3), jnp.float32)
    w3 = jax.random.normal(k8, (D_OUT3, D_IN3), jnp.float32) / jnp.sqrt(D_IN3)
    b3 = 0.1 * jax.random.normal(k9, (D_OUT3,), jnp.float32)

    out3 = jax.block_until_ready(linear_relu(x3, w3, b3, block_rows=16, block_cols=128))
    ref3 = reference(x3, w3, b3)
    assert out3.shape == (N3, D_OUT3)
    assert jnp.allclose(out3, ref3, atol=1e-5, rtol=1e-5), "case 3 mismatch"

    print("KERNEL_OK")
</pallas_src>

<mosaic_0001>
module attributes {stable_mosaic.version = 11 : i64} {
  func.func @_linear_relu_kernel(%arg0: i32, %arg1: i32, %arg2: memref<16x32xf32, #tpu.memory_space<vmem>>, %arg3: memref<32x128xf32, #tpu.memory_space<vmem>>, %arg4: memref<1x128xf32, #tpu.memory_space<vmem>>, %arg5: memref<16x128xf32, #tpu.memory_space<vmem>>) attributes {dimension_semantics = [#tpu.dimension_semantics<parallel>, #tpu.dimension_semantics<arbitrary>], iteration_bounds = array<i64: 1, 1>, scalar_prefetch = 0 : i64, scratch_operands = 0 : i64, tpu.core_type = #tpu.core_type<tc>, window_params = [{transform_indices = @transform_0, window_bounds = array<i64: 16, 32>}, {pipeline_mode = #tpu.pipeline_mode<synchronous>, transform_indices = @transform_1, window_bounds = array<i64: 32, 128>}, {pipeline_mode = #tpu.pipeline_mode<synchronous>, transform_indices = @transform_2, window_bounds = array<i64: 1, 128>}, {transform_indices = @transform_3, window_bounds = array<i64: 16, 128>}]} {
    %c0 = arith.constant 0 : index
    %c0_0 = arith.constant 0 : index
    %0 = vector.load %arg2[%c0, %c0_0] : memref<16x32xf32, #tpu.memory_space<vmem>>, vector<16x32xf32>
    %c0_1 = arith.constant 0 : index
    %c0_2 = arith.constant 0 : index
    %1 = vector.load %arg3[%c0_1, %c0_2] : memref<32x128xf32, #tpu.memory_space<vmem>>, vector<32x128xf32>
    %cst = arith.constant dense<0.000000e+00> : vector<16x128xf32>
    %2 = tpu.matmul %0, %1, %cst {dimension_numbers = #tpu.dot_dimension_numbers<[1], [0], [0], [1], [0, 0, 1, 1], [], []>} : vector<16x32xf32>, vector<32x128xf32>, vector<16x128xf32> -> vector<16x128xf32>
    %c0_3 = arith.constant 0 : index
    %c0_4 = arith.constant 0 : index
    %3 = vector.load %arg4[%c0_3, %c0_4] : memref<1x128xf32, #tpu.memory_space<vmem>>, vector<1x128xf32>
    %4 = vector.broadcast %3 : vector<1x128xf32> to vector<16x128xf32>
    %5 = arith.addf %2, %4 : vector<16x128xf32>
    %cst_5 = arith.constant 0.000000e+00 : f32
    %6 = vector.broadcast %cst_5 : f32 to vector<16x128xf32>
    %7 = arith.maximumf %5, %6 : vector<16x128xf32>
    %c0_6 = arith.constant 0 : index
    %c0_7 = arith.constant 0 : index
    %8 = vector.load %arg5[%c0_6, %c0_7] : memref<16x128xf32, #tpu.memory_space<vmem>>, vector<16x128xf32>
    tpu.vector_store %arg5[%c0_6, %c0_7], %7 {strides = array<i32>} : memref<16x128xf32, #tpu.memory_space<vmem>>, vector<16x128xf32>,
    return
  }
  func.func @transform_0(%arg0: i32, %arg1: i32) -> (i32, i32) {
    %c0_i32 = arith.constant 0 : i32
    %c0_i32_0 = arith.constant 0 : i32
    return %arg0, %c0_i32 : i32, i32
  }
  func.func @transform_1(%arg0: i32, %arg1: i32) -> (i32, i32) {
    %c0_i32 = arith.constant 0 : i32
    %c0_i32_0 = arith.constant 0 : i32
    return %c0_i32, %arg1 : i32, i32
  }
  func.func @transform_2(%arg0: i32, %arg1: i32) -> (i32, i32) {
    %c0_i32 = arith.constant 0 : i32
    %c0_i32_0 = arith.constant 0 : i32
    return %c0_i32, %arg1 : i32, i32
  }
  func.func @transform_3(%arg0: i32, %arg1: i32) -> (i32, i32) {
    %c0_i32 = arith.constant 0 : i32
    return %arg0, %arg1 : i32, i32
  }
}

</mosaic_0001>

<bundles_post_ra>
// kernel: tpu_custom_call.1
= control target key start
LH: loop header
LB: loop body
LE: loop exit
PB: predicated region body
PF: predicated region fallthrough
CT: control target
= control target key end

     0   :  { %8 = vsyncpa [#allocation3], 0  ;;  %s299_s0 = inlined_call_operand.hbm [shape: f32[16,32], index: 0, kind: input, shape index: {}]   ;;  %s300_s1 = inlined_call_operand.hbm [shape: f32[32,128], index: 1, kind: input, shape index: {}]   ;;  %s301_s2 = inlined_call_operand.vmem [shape: f32[1,128], index: 2, kind: input, shape index: {}]   ;;  %s302_s3 = inlined_call_operand.hbm [shape: f32[16,128], index: 3, kind: output, shape index: {}]  }
   0x1   :  { %9 = vsyncpa [#allocation6], 0 }
   0x2   :  { %10 = vsyncpa [#allocation4], 0  ;;  %s251_s12 = smov [#allocation2]  }
   0x3   :  { %s16_s13 = sshll.u32 %s251_s12, 4  ;;  %s17_s13 = int_to_ptr.vmem [resolvable:$true] %s16_s13 }
   0x4   :  { %s193_s14 = scalar_lea.vmem %s17_s13, 256  ;;  %p198_p1 = scmp.lt.s32.totalorder %s17_s13, %s17_s13 }
   0x5   :  { %p194_p0 = scmp.ne.s32.totalorder %s17_s13, %s193_s14  ;;  %p199_p2 = scmp.lt.s32.totalorder %s193_s14, %s193_s14 }
   0x7   :  { %p200_p3 = por %p199_p2, %p198_p1 }
   0x9   :  { %p201_p4 = pnand %p200_p3, %p194_p0 }
   0xb   :  { %204 = shalt.err (!%p201_p4)
}
   0xc   :  { %s252_s15 = smov 128   ;;  %s253_s16 = smov 8  }
   0xd   :  { %22 = dma.hbm_to_vmem [thread:$0]  %s299_s0, 256, %s17_s13, [#allocation3], %s252_s15, %s252_s15, %s253_s16  }
   0xe   :  { %s254_s19 = smov [#allocation5]  }
   0xf   :  { %s28_s20 = sshll.u32 %s254_s19, 4  ;;  %s29_s20 = int_to_ptr.vmem [resolvable:$true] %s28_s20 }
  0x10   :  { %s213_s21 = scalar_lea.vmem %s29_s20, 512  ;;  %p218_p6 = scmp.lt.s32.totalorder %s29_s20, %s29_s20 }
  0x11   :  { %p214_p5 = scmp.ne.s32.totalorder %s29_s20, %s213_s21  ;;  %p219_p7 = scmp.lt.s32.totalorder %s213_s21, %s213_s21 }
  0x13   :  { %p220_p8 = por %p219_p7, %p218_p6 }
  0x15   :  { %p221_p9 = pnand %p220_p8, %p214_p5 }
  0x17   :  { %224 = shalt.err (!%p221_p9)
}
  0x18   :  { %34 = dma.hbm_to_vmem [thread:$0]  %s300_s1, 512, %s29_s20, [#allocation6], %s252_s15, %s252_s15, %s253_s16  }
  0x19   :  { %245 = dma.done.wait [#allocation3], 256  }
  0x1a   :  { %246 = vsyncadd [#allocation3], 4294967040 }
  0x1b   :  { %247 = dma.done.wait [#allocation6], 512  }
  0x1c   :  { %248 = vsyncadd [#allocation6], 4294966784  ;;  %vm56_vm0 = vcmask 261120   ;;  %v48_v0 = vld [vmem:[#allocation5 + $0x18] sm:$0xff]  ;;  %v47_v1 = vld [vmem:[#allocation5 + $0x10] sm:$0xff]  ;;  %s255_s24 = smov [#allocation7]  }
  0x1d   :  { %169 = vmatprep.subr.mxu0 %v48_v0  ;;  %v43_v2 = vld [vmem:[#allocation2] sm:$0xff]  ;;  %v46_v3 = vld [vmem:[#allocation5 + $0x8] sm:$0xff]  ;;  %v45_v4 = vld [vmem:[#allocation5] sm:$0xff]  ;;  %s147_s25 = sshll.u32 %s255_s24, 4  ;;  %s148_s25 = int_to_ptr.vmem [resolvable:$true] %s147_s25 }
  0x1e   :  { %170 = vmatpush3.msra.mxu0 %v48_v0  ;;  %177 = vmatprep.mubr.msk.f32.mxu0 %vm56_vm0, %v43_v2  ;;  %v44_v5 = vld [vmem:[#allocation2 + $0x8] sm:$0xff]  ;;  %v160_v6 = vld [vmem:[%s301_s2] ss:$0 sm:$0xff]  ;;  %s225_s26 = scalar_lea.vmem %s148_s25, 256  ;;  %p230_p11 = scmp.lt.s32.totalorder %s148_s25, %s148_s25 }
  0x1f   :  { %171 = vmatprep.subr.mxu0 %v47_v1  ;;  %p226_p10 = scmp.ne.s32.totalorder %s148_s25, %s225_s26  ;;  %p231_p12 = scmp.lt.s32.totalorder %s225_s26, %s225_s26 }
  0x20   :  { %172 = vmatpush3.msra.mxu0 %v47_v1 }
  0x21   :  { %173 = vmatprep.subr.mxu0 %v46_v3  ;;  %p232_p13 = por %p231_p12, %p230_p11 }
  0x22   :  { %174 = vmatpush3.msra.mxu0 %v46_v3 }
  0x23   :  { %175 = vmatprep.subr.mxu0 %v45_v4  ;;  %p233_p0 = pnand %p232_p13, %p226_p10 }
  0x24   :  { %176 = vmatpush3.msra.mxu0 %v45_v4 }
  0x25   :  { %178 = vmatmul.mubr.msk.f32.vlgmr.msra.gmra.mxu0 %vm56_vm0, %v44_v5 }
  0xe5   :  { %v179_v7 = vpop.f32.mrf.mxu0 }
  0xe6   :  { %v135_v8 = vadd.f32 %v179_v7, %v160_v6 }
  0xe7   :  { %v129_v9 = vpop.f32.mrf.mxu0 }
  0xe8   :  { %v139_v10 = vmax.f32 %v135_v8, 0.0  ;;  %v130_v11 = vadd.f32 %v160_v6, %v129_v9 }
  0xea   :  { %141 = vst [vmem:[#allocation7 + $0x8] sm:$0xff] %v139_v10  ;;  %v138_v12 = vmax.f32 %v130_v11, 0.0 }
  0xec   :  { %140 = vst [vmem:[#allocation7] sm:$0xff] %v138_v12 }
  0xed   :  { %236 = shalt.err (!%p233_p0)
}
  0xee   :  { %153 = dma.vmem_to_hbm [thread:$0]  %s148_s25, 256, %s302_s3, [#allocation4], %s252_s15, %s252_s15, %s253_s16  }
  0xef   :  { %249 = dma.done.wait [#allocation4], 256  }
  0xf0   :  { %250 = vsyncadd [#allocation4], 4294967040 }
  0xf1   :  { %157 = vsyncpa [#allocation3], 1 }
  0xf2   :  { %158 = vsyncpa [#allocation6], 1 }
  0xf3   :  { %159 = vsyncpa [#allocation4], 1 }

</bundles_post_ra>
